<compile_context>
chip_gen: v5e
topology: v5e:2x2
jax: 0.10.0
libtpu: 0.0.40
codegen_flags: <defaults>
</compile_context>

<pallas_src>
import functools

import jax
import jax.numpy as jnp
from jax import lax
from jax.experimental import pallas as pl
from jax.experimental.pallas import tpu as pltpu

EPS = 1e-5  # nn.InstanceNorm2d default eps (affine=False, biased variance)


def _vmem_limit_bytes():
    """Per-generation VMEM budget (~3/4 of physical, clamped to [32, 100] MiB)."""
    try:
        cap = int(pltpu.get_tpu_info().vmem_capacity_bytes)
    except Exception:  # conservative fallback if the query is unavailable
        cap = 64 * 1024 * 1024
    return max(32 * 1024 * 1024, min(cap * 3 // 4, 100 * 1024 * 1024))


# ---------------------------------------------------------------------------
# Fused Pallas kernel: (3x3 conv -> InstanceNorm -> ReLU) x 2 for one batch
# element.  The spatial axis is flattened row-major with a 1-pixel column halo
# (lane stride W+2); every (dy, dx) tap is a contiguous lane-offset slice of
# the haloed slab, and the 3 dx taps per dy are stacked along the contraction
# (sublane) axis so each dy is a single MXU matmul with K = 3*C_in.
# ---------------------------------------------------------------------------
def _make_double_conv_kernel(c_mid, c_out, H, W):
    Wp = W + 2
    L_in = (H + 3) * Wp          # haloed slab: 1 top row, 2 bottom rows, 1 col L/R
    L_out = H * Wp
    inv_count = 1.0 / float(H * W)

    def conv_in_relu(slab, w_ref, mask):
        # slab:  (C_in, L_in) bf16, haloed row-major layout (row stride Wp).
        # w_ref: (3, C, 3*C_in) bf16 -- one dx-stacked weight block per dy.
        acc = None
        for dy in range(3):
            base = dy * Wp
            stacked = jnp.concatenate(
                [slab[:, base + dx:base + dx + L_out] for dx in range(3)],
                axis=0)                                    # (3*C_in, L_out) bf16
            part = jnp.dot(w_ref[dy], stacked,
                           preferred_element_type=jnp.float32)
            acc = part if acc is None else acc + part      # (C, L_out) f32
        # Single-pass masked InstanceNorm statistics (biased variance, f32).
        am = acc * mask
        mean = jnp.sum(am, axis=1, keepdims=True) * inv_count
        ex2 = jnp.sum(am * acc, axis=1, keepdims=True) * inv_count
        var = jnp.maximum(ex2 - mean * mean, 0.0)
        return jnp.maximum((acc - mean) * lax.rsqrt(var + EPS), 0.0)

    def kernel(mask_ref, x_ref, w1_ref, w2_ref, o_ref):
        mask = mask_ref[...]                               # (1, L_out) f32

        # Conv1 + InstanceNorm + ReLU (skip-concat already folded into K).
        h1 = conv_in_relu(x_ref[...], w1_ref, mask)        # (C_mid, L_out) f32

        # Re-halo h1 entirely in VMEM: zero 1 top row + left halo, zero the
        # column-halo lanes of h1 itself (they hold garbage), zero the tail
        # (right halo of the last row + 2 bottom rows).  The resulting slab is
        # exactly the zero-padded conv2 input in the same flattened layout.
        h1b = (h1 * mask).astype(jnp.bfloat16)
        h_slab = jnp.concatenate(
            [jnp.zeros((c_mid, Wp + 1), jnp.bfloat16),
             h1b,
             jnp.zeros((c_mid, L_in - L_out - Wp - 1), jnp.bfloat16)],
            axis=1)                                        # (C_mid, L_in) bf16

        # Conv2 + InstanceNorm + ReLU.
        h2 = conv_in_relu(h_slab, w2_ref, mask)            # (C_out, L_out) f32
        o_ref[...] = (h2 * mask).astype(o_ref.dtype)

    return kernel


def _pack_weight(w):
    """OIHW (C_out, C_in, 3, 3) -> (3, C_out, 3*C_in) bf16 with dx-major blocks."""
    c_out, c_in = w.shape[0], w.shape[1]
    return (jnp.transpose(w, (2, 0, 3, 1))
            .reshape(3, c_out, 3 * c_in)
            .astype(jnp.bfloat16))


def double_conv_fused(x_slab, w1, w2, H, W, out_dtype=jnp.float32):
    """Fused (conv3x3 -> InstanceNorm2d -> ReLU) x 2 over a haloed input slab.

    x_slab: (N, C_in, (H+3)*(W+2)) bf16 zero-haloed slab (1 top / 2 bottom
            rows, 1 col left/right), rows flattened with lane stride W+2.
    w1:     (C_mid, C_in, 3, 3) OIHW.    w2: (C_out, C_mid, 3, 3) OIHW.
    Returns (N, C_out, H, W) in out_dtype.
    """
    N, C_in, L_in = x_slab.shape
    C_mid, C_out = w1.shape[0], w2.shape[0]
    Wp = W + 2
    L_out = H * Wp
    assert L_in == (H + 3) * Wp, (L_in, H, W)

    w1f = _pack_weight(w1)
    w2f = _pack_weight(w2)

    # Valid-lane mask (halo columns x in {W, W+1} of each flattened row are
    # excluded from the norm statistics and zeroed before re-haloing/output).
    mask = ((jnp.arange(L_out, dtype=jnp.int32) % Wp) < W)
    mask = mask.astype(jnp.float32).reshape(1, L_out)

    kernel = _make_double_conv_kernel(C_mid, C_out, H, W)

    out = pl.pallas_call(
        kernel,
        out_shape=jax.ShapeDtypeStruct((N, C_out, L_out), out_dtype),
        grid_spec=pltpu.PrefetchScalarGridSpec(
            num_scalar_prefetch=0,
            grid=(N,),
            in_specs=[
                pl.BlockSpec((1, L_out), lambda n: (0, 0)),               # mask
                pl.BlockSpec((pl.Squeezed(), C_in, L_in), lambda n: (n, 0, 0)),
                pl.BlockSpec(w1f.shape, lambda n: (0, 0, 0)),
                pl.BlockSpec(w2f.shape, lambda n: (0, 0, 0)),
            ],
            out_specs=pl.BlockSpec((pl.Squeezed(), C_out, L_out),
                                   lambda n: (n, 0, 0)),
        ),
        compiler_params=pltpu.CompilerParams(
            dimension_semantics=("parallel",),
            vmem_limit_bytes=_vmem_limit_bytes(),
        ),
    )(mask, x_slab, w1f, w2f)

    # TODO(synk): compact to a lane-dense (C_out, H*W) output in-kernel (drops
    # the masked tail stores + this slice) once row tiling lands.
    return out.reshape(N, C_out, H, Wp)[:, :, :, :W]


# ---------------------------------------------------------------------------
# Glue (pure JAX): bilinear upsample (align_corners=True) and slab assembly.
# ---------------------------------------------------------------------------
def upsample_bilinear_align_corners(x, scale=2):
    # TODO(synk): upsample kept in plain JAX (gather + lerp); hot path is the
    # fused conv kernel.
    N, C, H, W = x.shape
    Ho, Wo = H * scale, W * scale

    def grid(n_in, n_out):
        if n_in == 1 or n_out == 1:
            pos = jnp.zeros((n_out,), jnp.float32)
        else:
            pos = jnp.arange(n_out, dtype=jnp.float32) * (n_in - 1) / (n_out - 1)
        lo = jnp.clip(jnp.floor(pos).astype(jnp.int32), 0, n_in - 1)
        hi = jnp.clip(lo + 1, 0, n_in - 1)
        frac = pos - lo.astype(jnp.float32)
        return lo, hi, frac

    ylo, yhi, fy = grid(H, Ho)
    xlo, xhi, fx = grid(W, Wo)
    top = x[:, :, ylo, :]
    bot = x[:, :, yhi, :]
    rows = top * (1.0 - fy)[None, None, :, None] + bot * fy[None, None, :, None]
    left = rows[:, :, :, xlo]
    right = rows[:, :, :, xhi]
    return left * (1.0 - fx)[None, None, None, :] + right * fx[None, None, None, :]


def up_forward(params, x1, x2):
    """Forward pass of Up(in_channels, out_channels, bilinear=True)."""
    x1 = upsample_bilinear_align_corners(x1, 2)
    N, _, H, W = x2.shape
    diffY = H - x1.shape[2]
    diffX = W - x1.shape[3]
    # Merge the skip-alignment pad and the 3x3 halo pad into one jnp.pad per
    # input, concat along channels (single contraction inside the kernel) and
    # flatten+cast to the haloed bf16 slab the kernel expects.
    x1p = jnp.pad(x1, ((0, 0), (0, 0),
                       (1 + diffY // 2, 2 + diffY - diffY // 2),
                       (1 + diffX // 2, 1 + diffX - diffX // 2)))
    x2p = jnp.pad(x2, ((0, 0), (0, 0), (1, 2), (1, 1)))
    slab = jnp.concatenate([x2p, x1p], axis=1)
    slab = slab.reshape(N, slab.shape[1], (H + 3) * (W + 2)).astype(jnp.bfloat16)
    return double_conv_fused(slab, params["w1"], params["w2"], H, W,
                             out_dtype=jnp.float32)


# ---------------------------------------------------------------------------
# Deterministic parameter init (PyTorch Conv2d-style uniform bounds).
# Biases are initialized for spec parity but are unused in the Pallas path
# (InstanceNorm's mean subtraction cancels a per-channel constant bias).
# ---------------------------------------------------------------------------
def init_up_params(key, in_channels, out_channels):
    mid = in_channels // 2
    k1, k2, k3, k4 = jax.random.split(key, 4)

    def conv_init(kw, kb, cin, cout):
        fan_in = cin * 9
        bound = 1.0 / (fan_in ** 0.5)
        w = jax.random.uniform(kw, (cout, cin, 3, 3), jnp.float32, -bound, bound)
        b = jax.random.uniform(kb, (cout,), jnp.float32, -bound, bound)
        return w, b

    w1, b1 = conv_init(k1, k2, in_channels, mid)
    w2, b2 = conv_init(k3, k4, mid, out_channels)
    return {"w1": w1, "b1": b1, "w2": w2, "b2": b2}


# ---------------------------------------------------------------------------
# Pure-JAX reference (lax.conv, bf16 operands / f32 accumulation to mirror the
# kernel's numerics; bias kept to demonstrate it is cancelled by the norm).
# ---------------------------------------------------------------------------
def _conv_in_relu_ref(x, w, b):
    y = lax.conv_general_dilated(
        x.astype(jnp.bfloat16), w.astype(jnp.bfloat16),
        window_strides=(1, 1), padding=((1, 1), (1, 1)),
        dimension_numbers=("NCHW", "OIHW", "NCHW"),
        preferred_element_type=jnp.float32)
    y = y + b[None, :, None, None]
    mean = y.mean(axis=(2, 3), keepdims=True)
    var = ((y - mean) ** 2).mean(axis=(2, 3), keepdims=True)
    y = (y - mean) * lax.rsqrt(var + EPS)
    return jnp.maximum(y, 0.0)


def up_forward_ref(params, x1, x2):
    x1 = upsample_bilinear_align_corners(x1, 2)
    diffY = x2.shape[2] - x1.shape[2]
    diffX = x2.shape[3] - x1.shape[3]
    x1 = jnp.pad(
        x1,
        ((0, 0), (0, 0),
         (diffY // 2, diffY - diffY // 2),
         (diffX // 2, diffX - diffX // 2)),
    )
    x = jnp.concatenate([x2, x1], axis=1)
    h = _conv_in_relu_ref(x, params["w1"], params["b1"])
    return _conv_in_relu_ref(h, params["w2"], params["b2"])


if __name__ == "__main__":
    key = jax.random.PRNGKey(0)
    kp, kx1, kx2 = jax.random.split(key, 3)

    in_channels, out_channels = 8, 4
    N, H2, W2 = 2, 16, 16
    # Standard UNet setup: x1 has in_channels//2 channels at half resolution,
    # x2 (skip connection) has in_channels//2 channels at full resolution.
    x1 = jax.random.normal(kx1, (N, in_channels // 2, H2 // 2, W2 // 2), jnp.float32)
    x2 = jax.random.normal(kx2, (N, in_channels // 2, H2, W2), jnp.float32)
    params = init_up_params(kp, in_channels, out_channels)

    fwd = jax.jit(functools.partial(up_forward, params))
    out = jax.block_until_ready(fwd(x1, x2))

    ref = up_forward_ref(params, x1, x2)
    assert out.shape == (N, out_channels, H2, W2), out.shape
    err = float(jnp.max(jnp.abs(out - ref)))
    assert err < 2e-2, err
    print("KERNEL_OK")
</pallas_src>

<mosaic_0001>
module attributes {stable_mosaic.version = 11 : i64} {
  func.func @kernel(%arg0: i32, %arg1: memref<1x288xf32, #tpu.memory_space<vmem>>, %arg2: memref<1x8x342xbf16, #tpu.memory_space<vmem>>, %arg3: memref<3x4x24xbf16, #tpu.memory_space<vmem>>, %arg4: memref<3x4x12xbf16, #tpu.memory_space<vmem>>, %arg5: memref<1x4x288xf32, #tpu.memory_space<vmem>>) attributes {dimension_semantics = [#tpu.dimension_semantics<parallel>], iteration_bounds = array<i64: 2>, scalar_prefetch = 0 : i64, scratch_operands = 0 : i64, tpu.core_type = #tpu.core_type<tc>, window_params = [{pipeline_mode = #tpu.pipeline_mode<synchronous>, transform_indices = @transform_0, window_bounds = array<i64: 1, 288>}, {transform_indices = @transform_1, window_bounds = array<i64: 1, 8, 342>}, {pipeline_mode = #tpu.pipeline_mode<synchronous>, transform_indices = @transform_2, window_bounds = array<i64: 3, 4, 24>}, {pipeline_mode = #tpu.pipeline_mode<synchronous>, transform_indices = @transform_3, window_bounds = array<i64: 3, 4, 12>}, {transform_indices = @transform_4, window_bounds = array<i64: 1, 4, 288>}]} {
    %c0 = arith.constant 0 : index
    %c0_0 = arith.constant 0 : index
    %0 = vector.load %arg1[%c0, %c0_0] : memref<1x288xf32, #tpu.memory_space<vmem>>, vector<1x288xf32>
    %c0_1 = arith.constant 0 : index
    %c0_2 = arith.constant 0 : index
    %c0_3 = arith.constant 0 : index
    %1 = vector.load %arg2[%c0_1, %c0_2, %c0_3] : memref<1x8x342xbf16, #tpu.memory_space<vmem>>, vector<1x8x342xbf16>
    %2 = vector.shape_cast %1 : vector<1x8x342xbf16> to vector<8x342xbf16>
    %3 = vector.extract_strided_slice %2 {offsets = [0, 0], sizes = [8, 288], strides = [1, 1]} : vector<8x342xbf16> to vector<8x288xbf16>
    %4 = vector.extract_strided_slice %2 {offsets = [0, 1], sizes = [8, 288], strides = [1, 1]} : vector<8x342xbf16> to vector<8x288xbf16>
    %5 = vector.extract_strided_slice %2 {offsets = [0, 2], sizes = [8, 288], strides = [1, 1]} : vector<8x342xbf16> to vector<8x288xbf16>
    %6 = tpu.concatenate %3, %4, %5 in 0 : vector<8x288xbf16>, vector<8x288xbf16>, vector<8x288xbf16> -> vector<24x288xbf16>
    %c0_4 = arith.constant 0 : index
    %c0_5 = arith.constant 0 : index
    %c0_6 = arith.constant 0 : index
    %7 = vector.load %arg3[%c0_4, %c0_5, %c0_6] : memref<3x4x24xbf16, #tpu.memory_space<vmem>>, vector<1x4x24xbf16>
    %8 = vector.shape_cast %7 : vector<1x4x24xbf16> to vector<4x24xbf16>
    %cst = arith.constant dense<0.000000e+00> : vector<4x288xf32>
    %9 = tpu.matmul %8, %6, %cst {dimension_numbers = #tpu.dot_dimension_numbers<[1], [0], [0], [1], [0, 0, 1, 1], [], []>} : vector<4x24xbf16>, vector<24x288xbf16>, vector<4x288xf32> -> vector<4x288xf32>
    %10 = vector.extract_strided_slice %2 {offsets = [0, 18], sizes = [8, 288], strides = [1, 1]} : vector<8x342xbf16> to vector<8x288xbf16>
    %11 = vector.extract_strided_slice %2 {offsets = [0, 19], sizes = [8, 288], strides = [1, 1]} : vector<8x342xbf16> to vector<8x288xbf16>
    %12 = vector.extract_strided_slice %2 {offsets = [0, 20], sizes = [8, 288], strides = [1, 1]} : vector<8x342xbf16> to vector<8x288xbf16>
    %13 = tpu.concatenate %10, %11, %12 in 0 : vector<8x288xbf16>, vector<8x288xbf16>, vector<8x288xbf16> -> vector<24x288xbf16>
    %c1 = arith.constant 1 : index
    %c0_7 = arith.constant 0 : index
    %c0_8 = arith.constant 0 : index
    %14 = vector.load %arg3[%c1, %c0_7, %c0_8] : memref<3x4x24xbf16, #tpu.memory_space<vmem>>, vector<1x4x24xbf16>
    %15 = vector.shape_cast %14 : vector<1x4x24xbf16> to vector<4x24xbf16>
    %cst_9 = arith.constant dense<0.000000e+00> : vector<4x288xf32>
    %16 = tpu.matmul %15, %13, %cst_9 {dimension_numbers = #tpu.dot_dimension_numbers<[1], [0], [0], [1], [0, 0, 1, 1], [], []>} : vector<4x24xbf16>, vector<24x288xbf16>, vector<4x288xf32> -> vector<4x288xf32>
    %17 = arith.addf %9, %16 : vector<4x288xf32>
    %18 = vector.extract_strided_slice %2 {offsets = [0, 36], sizes = [8, 288], strides = [1, 1]} : vector<8x342xbf16> to vector<8x288xbf16>
    %19 = vector.extract_strided_slice %2 {offsets = [0, 37], sizes = [8, 288], strides = [1, 1]} : vector<8x342xbf16> to vector<8x288xbf16>
    %20 = vector.extract_strided_slice %2 {offsets = [0, 38], sizes = [8, 288], strides = [1, 1]} : vector<8x342xbf16> to vector<8x288xbf16>
    %21 = tpu.concatenate %18, %19, %20 in 0 : vector<8x288xbf16>, vector<8x288xbf16>, vector<8x288xbf16> -> vector<24x288xbf16>
    %c2 = arith.constant 2 : index
    %c0_10 = arith.constant 0 : index
    %c0_11 = arith.constant 0 : index
    %22 = vector.load %arg3[%c2, %c0_10, %c0_11] : memref<3x4x24xbf16, #tpu.memory_space<vmem>>, vector<1x4x24xbf16>
    %23 = vector.shape_cast %22 : vector<1x4x24xbf16> to vector<4x24xbf16>
    %cst_12 = arith.constant dense<0.000000e+00> : vector<4x288xf32>
    %24 = tpu.matmul %23, %21, %cst_12 {dimension_numbers = #tpu.dot_dimension_numbers<[1], [0], [0], [1], [0, 0, 1, 1], [], []>} : vector<4x24xbf16>, vector<24x288xbf16>, vector<4x288xf32> -> vector<4x288xf32>
    %25 = arith.addf %17, %24 : vector<4x288xf32>
    %26 = vector.broadcast %0 : vector<1x288xf32> to vector<4x288xf32>
    %27 = arith.mulf %25, %26 : vector<4x288xf32>
    %cst_13 = arith.constant dense<0.000000e+00> : vector<4xf32>
    %28 = vector.multi_reduction <add>, %27, %cst_13 [1] : vector<4x288xf32> to vector<4xf32>
    %29 = vector.shape_cast %28 : vector<4xf32> to vector<4x1xf32>
    %cst_14 = arith.constant 3.906250e-03 : f32
    %30 = vector.broadcast %cst_14 : f32 to vector<4x1xf32>
    %31 = arith.mulf %29, %30 : vector<4x1xf32>
    %32 = arith.mulf %27, %25 : vector<4x288xf32>
    %cst_15 = arith.constant dense<0.000000e+00> : vector<4xf32>
    %33 = vector.multi_reduction <add>, %32, %cst_15 [1] : vector<4x288xf32> to vector<4xf32>
    %34 = vector.shape_cast %33 : vector<4xf32> to vector<4x1xf32>
    %cst_16 = arith.constant 3.906250e-03 : f32
    %35 = vector.broadcast %cst_16 : f32 to vector<4x1xf32>
    %36 = arith.mulf %34, %35 : vector<4x1xf32>
    %37 = arith.mulf %31, %31 : vector<4x1xf32>
    %38 = arith.subf %36, %37 : vector<4x1xf32>
    %cst_17 = arith.constant 0.000000e+00 : f32
    %39 = vector.broadcast %cst_17 : f32 to vector<4x1xf32>
    %40 = arith.maximumf %38, %39 : vector<4x1xf32>
    %41 = vector.broadcast %31 : vector<4x1xf32> to vector<4x288xf32>
    %42 = arith.subf %25, %41 : vector<4x288xf32>
    %cst_18 = arith.constant 9.99999974E-6 : f32
    %43 = vector.broadcast %cst_18 : f32 to vector<4x1xf32>
    %44 = arith.addf %40, %43 : vector<4x1xf32>
    %45 = math.rsqrt %44 : vector<4x1xf32>
    %46 = vector.broadcast %45 : vector<4x1xf32> to vector<4x288xf32>
    %47 = arith.mulf %42, %46 : vector<4x288xf32>
    %cst_19 = arith.constant 0.000000e+00 : f32
    %48 = vector.broadcast %cst_19 : f32 to vector<4x288xf32>
    %49 = arith.maximumf %47, %48 : vector<4x288xf32>
    %50 = vector.broadcast %0 : vector<1x288xf32> to vector<4x288xf32>
    %51 = arith.mulf %49, %50 : vector<4x288xf32>
    %52 = arith.truncf %51 : vector<4x288xf32> to vector<4x288xbf16>
    %cst_20 = arith.constant 0.000000e+00 : bf16
    %53 = vector.broadcast %cst_20 : bf16 to vector<4x19xbf16>
    %cst_21 = arith.constant 0.000000e+00 : bf16
    %54 = vector.broadcast %cst_21 : bf16 to vector<4x35xbf16>
    %55 = tpu.concatenate %53, %52, %54 in 1 : vector<4x19xbf16>, vector<4x288xbf16>, vector<4x35xbf16> -> vector<4x342xbf16>
    %56 = vector.extract_strided_slice %55 {offsets = [0, 0], sizes = [4, 288], strides = [1, 1]} : vector<4x342xbf16> to vector<4x288xbf16>
    %57 = vector.extract_strided_slice %55 {offsets = [0, 1], sizes = [4, 288], strides = [1, 1]} : vector<4x342xbf16> to vector<4x288xbf16>
    %58 = vector.extract_strided_slice %55 {offsets = [0, 2], sizes = [4, 288], strides = [1, 1]} : vector<4x342xbf16> to vector<4x288xbf16>
    %59 = tpu.concatenate %56, %57, %58 in 0 : vector<4x288xbf16>, vector<4x288xbf16>, vector<4x288xbf16> -> vector<12x288xbf16>
    %c0_22 = arith.constant 0 : index
    %c0_23 = arith.constant 0 : index
    %c0_24 = arith.constant 0 : index
    %60 = vector.load %arg4[%c0_22, %c0_23, %c0_24] : memref<3x4x12xbf16, #tpu.memory_space<vmem>>, vector<1x4x12xbf16>
    %61 = vector.shape_cast %60 : vector<1x4x12xbf16> to vector<4x12xbf16>
    %cst_25 = arith.constant dense<0.000000e+00> : vector<4x288xf32>
    %62 = tpu.matmul %61, %59, %cst_25 {dimension_numbers = #tpu.dot_dimension_numbers<[1], [0], [0], [1], [0, 0, 1, 1], [], []>} : vector<4x12xbf16>, vector<12x288xbf16>, vector<4x288xf32> -> vector<4x288xf32>
    %63 = vector.extract_strided_slice %55 {offsets = [0, 18], sizes = [4, 288], strides = [1, 1]} : vector<4x342xbf16> to vector<4x288xbf16>
    %64 = vector.extract_strided_slice %55 {offsets = [0, 19], sizes = [4, 288], strides = [1, 1]} : vector<4x342xbf16> to vector<4x288xbf16>
    %65 = vector.extract_strided_slice %55 {offsets = [0, 20], sizes = [4, 288], strides = [1, 1]} : vector<4x342xbf16> to vector<4x288xbf16>
    %66 = tpu.concatenate %63, %64, %65 in 0 : vector<4x288xbf16>, vector<4x288xbf16>, vector<4x288xbf16> -> vector<12x288xbf16>
    %c1_26 = arith.constant 1 : index
    %c0_27 = arith.constant 0 : index
    %c0_28 = arith.constant 0 : index
    %67 = vector.load %arg4[%c1_26, %c0_27, %c0_28] : memref<3x4x12xbf16, #tpu.memory_space<vmem>>, vector<1x4x12xbf16>
    %68 = vector.shape_cast %67 : vector<1x4x12xbf16> to vector<4x12xbf16>
    %cst_29 = arith.constant dense<0.000000e+00> : vector<4x288xf32>
    %69 = tpu.matmul %68, %66, %cst_29 {dimension_numbers = #tpu.dot_dimension_numbers<[1], [0], [0], [1], [0, 0, 1, 1], [], []>} : vector<4x12xbf16>, vector<12x288xbf16>, vector<4x288xf32> -> vector<4x288xf32>
    %70 = arith.addf %62, %69 : vector<4x288xf32>
    %71 = vector.extract_strided_slice %55 {offsets = [0, 36], sizes = [4, 288], strides = [1, 1]} : vector<4x342xbf16> to vector<4x288xbf16>
    %72 = vector.extract_strided_slice %55 {offsets = [0, 37], sizes = [4, 288], strides = [1, 1]} : vector<4x342xbf16> to vector<4x288xbf16>
    %73 = vector.extract_strided_slice %55 {offsets = [0, 38], sizes = [4, 288], strides = [1, 1]} : vector<4x342xbf16> to vector<4x288xbf16>
    %74 = tpu.concatenate %71, %72, %73 in 0 : vector<4x288xbf16>, vector<4x288xbf16>, vector<4x288xbf16> -> vector<12x288xbf16>
    %c2_30 = arith.constant 2 : index
    %c0_31 = arith.constant 0 : index
    %c0_32 = arith.constant 0 : index
    %75 = vector.load %arg4[%c2_30, %c0_31, %c0_32] : memref<3x4x12xbf16, #tpu.memory_space<vmem>>, vector<1x4x12xbf16>
    %76 = vector.shape_cast %75 : vector<1x4x12xbf16> to vector<4x12xbf16>
    %cst_33 = arith.constant dense<0.000000e+00> : vector<4x288xf32>
    %77 = tpu.matmul %76, %74, %cst_33 {dimension_numbers = #tpu.dot_dimension_numbers<[1], [0], [0], [1], [0, 0, 1, 1], [], []>} : vector<4x12xbf16>, vector<12x288xbf16>, vector<4x288xf32> -> vector<4x288xf32>
    %78 = arith.addf %70, %77 : vector<4x288xf32>
    %79 = vector.broadcast %0 : vector<1x288xf32> to vector<4x288xf32>
    %80 = arith.mulf %78, %79 : vector<4x288xf32>
    %cst_34 = arith.constant dense<0.000000e+00> : vector<4xf32>
    %81 = vector.multi_reduction <add>, %80, %cst_34 [1] : vector<4x288xf32> to vector<4xf32>
    %82 = vector.shape_cast %81 : vector<4xf32> to vector<4x1xf32>
    %cst_35 = arith.constant 3.906250e-03 : f32
    %83 = vector.broadcast %cst_35 : f32 to vector<4x1xf32>
    %84 = arith.mulf %82, %83 : vector<4x1xf32>
    %85 = arith.mulf %80, %78 : vector<4x288xf32>
    %cst_36 = arith.constant dense<0.000000e+00> : vector<4xf32>
    %86 = vector.multi_reduction <add>, %85, %cst_36 [1] : vector<4x288xf32> to vector<4xf32>
    %87 = vector.shape_cast %86 : vector<4xf32> to vector<4x1xf32>
    %cst_37 = arith.constant 3.906250e-03 : f32
    %88 = vector.broadcast %cst_37 : f32 to vector<4x1xf32>
    %89 = arith.mulf %87, %88 : vector<4x1xf32>
    %90 = arith.mulf %84, %84 : vector<4x1xf32>
    %91 = arith.subf %89, %90 : vector<4x1xf32>
    %cst_38 = arith.constant 0.000000e+00 : f32
    %92 = vector.broadcast %cst_38 : f32 to vector<4x1xf32>
    %93 = arith.maximumf %91, %92 : vector<4x1xf32>
    %94 = vector.broadcast %84 : vector<4x1xf32> to vector<4x288xf32>
    %95 = arith.subf %78, %94 : vector<4x288xf32>
    %cst_39 = arith.constant 9.99999974E-6 : f32
    %96 = vector.broadcast %cst_39 : f32 to vector<4x1xf32>
    %97 = arith.addf %93, %96 : vector<4x1xf32>
    %98 = math.rsqrt %97 : vector<4x1xf32>
    %99 = vector.broadcast %98 : vector<4x1xf32> to vector<4x288xf32>
    %100 = arith.mulf %95, %99 : vector<4x288xf32>
    %cst_40 = arith.constant 0.000000e+00 : f32
    %101 = vector.broadcast %cst_40 : f32 to vector<4x288xf32>
    %102 = arith.maximumf %100, %101 : vector<4x288xf32>
    %103 = vector.broadcast %0 : vector<1x288xf32> to vector<4x288xf32>
    %104 = arith.mulf %102, %103 : vector<4x288xf32>
    %c0_41 = arith.constant 0 : index
    %c0_42 = arith.constant 0 : index
    %c0_43 = arith.constant 0 : index
    %105 = vector.load %arg5[%c0_41, %c0_42, %c0_43] : memref<1x4x288xf32, #tpu.memory_space<vmem>>, vector<1x4x288xf32>
    %106 = vector.shape_cast %105 : vector<1x4x288xf32> to vector<4x288xf32>
    %107 = vector.shape_cast %104 : vector<4x288xf32> to vector<1x4x288xf32>
    tpu.vector_store %arg5[%c0_41, %c0_42, %c0_43], %107 {strides = array<i32>} : memref<1x4x288xf32, #tpu.memory_space<vmem>>, vector<1x4x288xf32>,
    return
  }
  func.func @transform_0(%arg0: i32) -> (i32, i32) {
    %c0_i32 = arith.constant 0 : i32
    %c0_i32_0 = arith.constant 0 : i32
    %c0_i32_1 = arith.constant 0 : i32
    return %c0_i32, %c0_i32_0 : i32, i32
  }
  func.func @transform_1(%arg0: i32) -> (i32, i32, i32) {
    %c0_i32 = arith.constant 0 : i32
    %c0_i32_0 = arith.constant 0 : i32
    %c0_i32_1 = arith.constant 0 : i32
    return %arg0, %c0_i32, %c0_i32_0 : i32, i32, i32
  }
  func.func @transform_2(%arg0: i32) -> (i32, i32, i32) {
    %c0_i32 = arith.constant 0 : i32
    %c0_i32_0 = arith.constant 0 : i32
    %c0_i32_1 = arith.constant 0 : i32
    %c0_i32_2 = arith.constant 0 : i32
    return %c0_i32, %c0_i32_0, %c0_i32_1 : i32, i32, i32
  }
  func.func @transform_3(%arg0: i32) -> (i32, i32, i32) {
    %c0_i32 = arith.constant 0 : i32
    %c0_i32_0 = arith.constant 0 : i32
    %c0_i32_1 = arith.constant 0 : i32
    %c0_i32_2 = arith.constant 0 : i32
    return %c0_i32, %c0_i32_0, %c0_i32_1 : i32, i32, i32
  }
  func.func @transform_4(%arg0: i32) -> (i32, i32, i32) {
    %c0_i32 = arith.constant 0 : i32
    %c0_i32_0 = arith.constant 0 : i32
    %c0_i32_1 = arith.constant 0 : i32
    return %arg0, %c0_i32, %c0_i32_0 : i32, i32, i32
  }
}

</mosaic_0001>

<bundles_post_ra>
// kernel: up_forward.1
= control target key start
LH: loop header
LB: loop body
LE: loop exit
PB: predicated region body
PF: predicated region fallthrough
CT: control target
= control target key end

     0   :  { %s942_s15 = smov 0   ;;  %s1120_s0 = inlined_call_operand.vmem [shape: f32[1,288], index: 0, kind: input, shape index: {}]   ;;  %s1121_s1 = inlined_call_operand.vmem [shape: bf16[2,8,342], index: 1, kind: input, shape index: {}]   ;;  %s1122_s2 = inlined_call_operand.vmem [shape: bf16[3,4,24], index: 2, kind: input, shape index: {}]   ;;  %s1123_s3 = inlined_call_operand.vmem [shape: bf16[3,4,12], index: 3, kind: input, shape index: {}]   ;;  %s1124_s4 = inlined_call_operand.vmem [shape: f32[2,4,288], index: 4, kind: output, shape index: {}]  }
   0x1 LB: > { %s855_s16 = sadd.s32 4294967295, %s910_s15   ;;  %p859_p0 = scmp.ge.s32.totalorder %s910_s15, 1  ;;  %s910_s15 = sphi %s942_s15, %s14_s15  }
   0x2   : > { %p162_p1 = scmp.lt.s32.totalorder %s910_s15, 3 }
   0x4   : > { %p163_p2 = pnand %p859_p0, %p162_p1 }
   0x5   : > { %p188_p3 = scmp.lt.s32.totalorder (!%p163_p2), %s855_s16, 1  ;;  %s912_s21 = smov (!%p163_p2), 126  }
   0x6   : > { %166 = sbr.rel (%p163_p2) target bundleno = 1260 (0x4ec), region = 36  ;;  %s913_s22 = smov (!%p163_p2), 127  }
   0x7   : > { %s914_s23 = smov (!%p163_p2), 110   ;;  %s915_s24 = smov (!%p163_p2), 92  }
   0x8   : > { %s916_s7 = smov (!%p163_p2), 19  }
   0xb   : > { %s1126_s16 = smov (!%p188_p3, %s855_s16), 1  ;;  %vm216_vm0 = vcmask 1039360   ;;  %vm225_vm1 = vcmask 1031168   ;;  %vm228_vm2 = vcmask 1043456   ;;  %v241_v22 = vld [vmem:[%s1122_s2] sm:$0x3] }
   0xc   : > { %s886_s17 = smul.u32 12, %s1126_s16  ;;  %vm267_vm3 = vcmask 195584   ;;  %vm259_vm4 = vcmask 900096   ;;  %v862_v37 = vld [vmem:[%s1122_s2 + $0x2] sm:$0x3]  ;;  %vm384_vm5 = vcmask 752640  }
   0xd   : > { %v869_v52 = vld [vmem:[%s1122_s2 + $0x4] sm:$0x3]  ;;  %v199_v63 = vld [vmem:[%s1120_s0] sm:$0x7]  ;;  %vm459_vm6 = vcmask 257024   ;;  %vm518_vm10 = vcmask 154624  }
   0xe   : > { %s192_s20 = scalar_lea.vmem %s1121_s1, %s886_s17  ;;  %vm525_vm11 = vcmask 416768   ;;  %vm552_vm12 = vcmask 1041408   ;;  %vm584_vm13 = vcmask 1045504   ;;  %vm580_vm14 = vcmask 97280   ;;  %s197_s19 = scalar_lea.vmem %s1124_s4, %s886_s17 }
   0xf   : > { %v201_v0 = vld [vmem:[%s192_s20 + $0x8] sm:$0xf]  ;;  %v200_v1 = vld [vmem:[%s192_s20] sm:$0xff] }
  0x10   : > { %v206_v2 = vunpack.c.l.b16 %v201_v0  ;;  %v204_v3 = vunpack.c.l.b16 %v200_v1  ;;  %v205_v4 = vunpack.c.h.b16 %v200_v1 }
  0x12   : > { %v209_v5 = vpack.c.b16 %v206_v2, %v206_v2  ;;  %v207_v6 = vpack.c.b16 %v204_v3, %v204_v3  ;;  %v208_v7 = vpack.c.b16 %v205_v4, %v205_v4 }
  0x14   : > { %223 = vrot.lane.b32.xlu1 %v209_v5, %s912_s21  ;;  %219 = vrot.lane.b32.xlu0 %v207_v6, %s912_s21 }
  0x15   : > { %212 = vrot.lane.b32.xlu2 %v208_v7, %s913_s22 }
  0x1c   : > { %210 = vrot.lane.b32.xlu1 %v207_v6, %s913_s22  ;;  %221 = vrot.lane.b32.xlu0 %v208_v7, %s912_s21 }
  0x1d   : > { %214 = vrot.lane.b32.xlu2 %v209_v5, %s913_s22 }
  0x6f   : > { %v213_v10 = vpop.permute.xlu2 %212 }
  0x77   : > { %v215_v18 = vpop.permute.xlu2 %214 }
  0x78   : > { %v218_v19 = vsel %vm216_vm0, %v213_v10, %v215_v18  ;;  %v239_v21 = vsel %vm228_vm2, %v209_v5, %v215_v18  ;;  %v1027_v5 = vperm.slane %v199_v63, 1 }
  0x79   : > { %v235_v20 = vsel %vm228_vm2, %v208_v7, %v218_v19 }
  0x86   : > { %v964_v8 = vpop.permute.xlu1 %223  ;;  %v220_v9 = vpop.permute.xlu0 %219 }
  0x87   : > { %v329_v40 = vsel %vm228_vm2, %v964_v8, 0 }
  0x8e   : > { %v211_v11 = vpop.permute.xlu1 %210  ;;  %v222_v12 = vpop.permute.xlu0 %221 }
  0x8f   : > { %v217_v13 = vsel %vm216_vm0, %v211_v11, %v213_v10  ;;  %v227_v14 = vsel %vm225_vm1, %v222_v12, %v964_v8  ;;  %v226_v15 = vsel %vm225_vm1, %v220_v9, %v222_v12 }
  0x90   : > { %255 = vrot.lane.b32.xlu1 %v227_v14, %s914_s23  ;;  %253 = vrot.lane.b32.xlu0 %v226_v15, %s914_s23  ;;  %v231_v16 = vsel %vm228_vm2, %v207_v6, %v217_v13  ;;  %v323_v17 = vsel %vm228_vm2, %v226_v15, 0  ;;  %v326_v36 = vsel %vm228_vm2, %v227_v14, 0  ;;  %v1029_v6 = vperm.slane %v199_v63, 0 }
  0x91   : > { %247 = vrot.lane.b32.xlu2 %v231_v16, %s914_s23  ;;  %337 = vmatpush.bf16.msra.mxu3 %v323_v17 }
  0x95   : > { %338 = vmatpush.bf16.msra.mxu3 %v231_v16 }
  0x98   : > { %257 = vrot.lane.b32.xlu1 %v964_v8, %s914_s23  ;;  %249 = vrot.lane.b32.xlu0 %v235_v20, %s914_s23 }
  0x99   : > { %251 = vrot.lane.b32.xlu2 %v239_v21, %s914_s23  ;;  %866 = vmatmul.msk.bf16.vlgmr.msra.gmra.mxu3 %vm267_vm3, %v241_v22 }
  0xa0   : > { %380 = vrot.lane.b32.xlu1 %v227_v14, %s915_s24  ;;  %378 = vrot.lane.b32.xlu0 %v226_v15, %s915_s24  ;;  %v1033_v15 = vperm.slane %v199_v63, 2 }
  0xa1   : > { %382 = vrot.lane.b32.xlu2 %v964_v8, %s915_s24 }
  0xa8   : > { %374 = vrot.lane.b32.xlu1 %v235_v20, %s915_s24  ;;  %372 = vrot.lane.b32.xlu0 %v231_v16, %s915_s24 }
  0xa9   : > { %376 = vrot.lane.b32.xlu2 %v239_v21, %s915_s24 }
  0xeb   : > { %v248_v23 = vpop.permute.xlu2 %247 }
  0xf3   : > { %v252_v24 = vpop.permute.xlu2 %251 }
  0xfb   : > { %v383_v31 = vpop.permute.xlu2 %382 }
  0xfc   : > { %v402_v39 = vsel %vm228_vm2, %v383_v31, 0 }
 0x102   : > { %v256_v25 = vpop.permute.xlu1 %255  ;;  %v254_v26 = vpop.permute.xlu0 %253 }
 0x103   : > { %v262_v27 = vsel %vm259_vm4, %v254_v26, %v256_v25  ;;  %v377_v47 = vpop.permute.xlu2 %376 }
 0x104   : > { %v272_v28 = vsel %vm228_vm2, %v262_v27, 0 }
 0x105   : > { %286 = vmatpush.bf16.msra.mxu0 %v272_v28 }
 0x10a   : > { %v258_v29 = vpop.permute.xlu1 %257  ;;  %v250_v30 = vpop.permute.xlu0 %249 }
 0x10b   : > { %v260_v32 = vsel %vm259_vm4, %v248_v23, %v250_v30  ;;  %v278_v33 = vsel %vm228_vm2, %v258_v29, 0  ;;  %v263_v34 = vsel %vm259_vm4, %v256_v25, %v258_v29  ;;  %v261_v38 = vsel %vm259_vm4, %v250_v30, %v252_v24 }
 0x10c   : > { %287 = vmatpush.bf16.msra.mxu0 %v260_v32  ;;  %312 = vmatpush.bf16.msra.mxu2 %v278_v33  ;;  %v275_v35 = vsel %vm228_vm2, %v263_v34, 0 }
 0x10d   : > { %299 = vmatpush.bf16.msra.mxu1 %v275_v35 }
 0x10f   : > { %863 = vmatmul.msk.bf16.vlgmr.msra.gmra.mxu0 %vm267_vm3, %v862_v37 }
 0x110   : > { %350 = vmatpush.bf16.msrb.mxu0 %v326_v36  ;;  %313 = vmatpush.bf16.msra.mxu2 %v252_v24 }
 0x111   : > { %300 = vmatpush.bf16.msra.mxu1 %v261_v38 }
 0x112   : > { %v381_v41 = vpop.permute.xlu1 %380  ;;  %v379_v42 = vpop.permute.xlu0 %378 }
 0x113   : > { %865 = vmatmul.msk.bf16.vlgmr.msra.gmra.mxu2 %vm267_vm3, %v862_v37  ;;  %v387_v43 = vsel %vm384_vm5, %v379_v42, %v381_v41  ;;  %v388_v44 = vsel %vm384_vm5, %v381_v41, %v383_v31 }
 0x114   : > { %351 = vmatpush.bf16.msrb.mxu0 %v235_v20  ;;  %864 = vmatmul.msk.bf16.vlgmr.msra.gmra.mxu1 %vm267_vm3, %v862_v37  ;;  %v396_v45 = vsel %vm228_vm2, %v387_v43, 0  ;;  %v399_v46 = vsel %vm228_vm2, %v388_v44, 0 }
 0x115   : > { %363 = vmatpush.bf16.msrb.mxu1 %v329_v40  ;;  %410 = vmatpush.bf16.msrb.mxu2 %v396_v45 }
 0x116   : > { %423 = vmatpush.bf16.msrb.mxu3 %v399_v46 }
 0x118   : > { %436 = vmatpush.bf16.msra.mxu0 %v402_v39 }
 0x119   : > { %364 = vmatpush.bf16.msrb.mxu1 %v239_v21 }
 0x11a   : > { %v375_v48 = vpop.permute.xlu1 %374  ;;  %v373_v49 = vpop.permute.xlu0 %372 }
 0x11b   : > { %v385_v50 = vsel %vm384_vm5, %v373_v49, %v375_v48  ;;  %v386_v51 = vsel %vm384_vm5, %v375_v48, %v377_v47 }
 0x11c   : > { %437 = vmatpush.bf16.msra.mxu0 %v377_v47  ;;  %411 = vmatpush.bf16.msrb.mxu2 %v385_v50  ;;  %v340_v53 = vpop.f32.mrf.mxu3 }
 0x11d   : > { %424 = vmatpush.bf16.msrb.mxu3 %v386_v51 }
 0x11f   : > { %867 = vmatmul.msk.bf16.vlgmr.msrb.gmra.mxu0 %vm267_vm3, %v241_v22 }
 0x120   : > { %871 = vmatmul.msk.bf16.vlgmr.msrb.gmra.mxu3 %vm267_vm3, %v869_v52 }
 0x123   : > { %870 = vmatmul.msk.bf16.vlgmr.msrb.gmra.mxu2 %vm267_vm3, %v869_v52 }
 0x124   : > { %868 = vmatmul.msk.bf16.vlgmr.msrb.gmra.mxu1 %vm267_vm3, %v241_v22  ;;  %v342_v54 = vpop.f32.mrf.mxu3 }
 0x12f   : > { %872 = vmatmul.msk.bf16.vlgmr.msra.gmra.mxu0 %vm267_vm3, %v869_v52 }
 0x18c   : > { %v289_v55 = vpop.f32.mrf.mxu0 }
 0x18d   : > { %v341_v3 = vadd.f32 %v340_v53, %v289_v55 }
 0x191   : > { %v302_v56 = vpop.f32.mrf.mxu1 }
 0x194   : > { %v291_v57 = vpop.f32.mrf.mxu0 }
 0x196   : > { %v315_v58 = vpop.f32.mrf.mxu2 }
 0x199   : > { %v304_v59 = vpop.f32.mrf.mxu1 }
 0x19c   : > { %v353_v60 = vpop.f32.mrf.mxu0 }
 0x19d   : > { %v354_v1 = vadd.f32 %v353_v60, %v302_v56 }
 0x19e   : > { %v317_v61 = vpop.f32.mrf.mxu2 }
 0x1a1   : > { %v366_v62 = vpop.f32.mrf.mxu1 }
 0x1a2   : > { %v367_v13 = vadd.f32 %v366_v62, %v315_v58 }
 0x1a3   : > { %v426_v0 = vpop.f32.mrf.mxu3 }
 0x1a4   : > { %v355_v2 = vpop.f32.mrf.mxu0  ;;  %v444_v4 = vadd.f32 %v426_v0, %v354_v1 }
 0x1a6   : > { %v413_v7 = vpop.f32.mrf.mxu2  ;;  %v454_v9 = vmul.f32 %v1027_v5, %v444_v4 }
 0x1a7   : > { %v443_v8 = vadd.f32 %v413_v7, %v341_v3 }
 0x1a8   : > { %v466_v17 = vmul.f32 %v454_v9, %v444_v4  ;;  %v457_v22 = vsel %vm228_vm2, %v454_v9, 0.0 }
 0x1a9   : > { %v453_v10 = vmul.f32 %v1029_v6, %v443_v8  ;;  %v368_v11 = vpop.f32.mrf.mxu1 }
 0x1aa   : > { %v469_v27 = vsel %vm228_vm2, %v466_v17, 0.0 }
 0x1ab   : > { %v428_v12 = vpop.f32.mrf.mxu3  ;;  %v465_v14 = vmul.f32 %v453_v10, %v443_v8  ;;  %v456_v19 = vsel %vm228_vm2, %v453_v10, 0.0 }
 0x1ac   : > { %v439_v16 = vpop.f32.mrf.mxu0  ;;  %v458_v24 = vadd.f32 %v457_v22, %v456_v19 }
 0x1ad   : > { %v445_v18 = vadd.f32 %v439_v16, %v367_v13  ;;  %v468_v23 = vsel %vm228_vm2, %v465_v14, 0.0 }
 0x1ae   : > { %v415_v20 = vpop.f32.mrf.mxu2  ;;  %v470_v29 = vadd.f32 %v469_v27, %v468_v23 }
 0x1af   : > { %v455_v21 = vmul.f32 %v1033_v15, %v445_v18 }
 0x1b1   : > { %v460_v25 = vsel %vm459_vm6, %v455_v21, 0.0  ;;  %v467_v26 = vmul.f32 %v455_v21, %v445_v18 }
 0x1b2   : > { %v461_v28 = vadd.f32 %v460_v25, %v458_v24 }
 0x1b3   : > { %v471_v30 = vsel %vm459_vm6, %v467_v26, 0.0 }
 0x1b4   : > { %v441_v31 = vpop.f32.mrf.mxu0  ;;  %462 = vadd.xlane.f32.xlu0 %v461_v28  ;;  %v472_v32 = vadd.f32 %v471_v30, %v470_v29 }
 0x1b6   : > { %473 = vadd.xlane.f32.xlu1 %v472_v32 }
 0x227   : > { %v463_v33 = vpop.xlane.xlu0 %462 }
 0x228   : > { %v464_v34 = vmul.f32 0.00390625, %v463_v33 }
 0x229   : > { %v474_v35 = vpop.xlane.xlu1 %473 }
 0x22a   : > { %v475_v36 = vmul.f32 0.00390625, %v474_v35  ;;  %v476_v37 = vmul.f32 %v464_v34, %v464_v34  ;;  %v479_v47 = vsub.f32 %v443_v8, %v464_v34  ;;  %v480_v48 = vsub.f32 %v444_v4, %v464_v34 }
 0x22b   : > { %v481_v49 = vsub.f32 %v445_v18, %v464_v34 }
 0x22c   : > { %v477_v38 = vsub.f32 %v475_v36, %v476_v37  ;;  %v566_v37 = vld [vmem:[%s1123_s3] sm:$0x3] }
 0x22e   : > { %v478_v39 = vmax.f32 %v477_v38, 0.0 }
 0x230   : > { %v482_v40 = vadd.f32 1e-05, %v478_v39 }
 0x232   : > { %900 = vrsqrt.f32 %v482_v40  ;;  %vm489_vm8 = vweird.f32 %v482_v40 }
 0x238   : > { %v901_v41 = vpop.eup %900 }
 0x239   : > { %v484_v42 = vmul.f32 %v901_v41, %v482_v40  ;;  %vm490_vm7 = vweird.f32 %v901_v41 }
 0x23a   : > { %vm491_vm9 = vmor %vm489_vm8, %vm490_vm7 }
 0x23b   : > { %v485_v43 = vmul.f32 %v901_v41, %v484_v42 }
 0x23d   : > { %v486_v44 = vmul.f32 0.5, %v485_v43 }
 0x23f   : > { %v487_v45 = vsub.f32 1.5, %v486_v44 }
 0x241   : > { %v488_v46 = vmul.f32 %v901_v41, %v487_v45 }
 0x243   : > { %v492_v50 = vsel %vm491_vm9, %v901_v41, %v488_v46  ;;  %v873_v41 = vld [vmem:[%s1123_s3 + $0x2] sm:$0x3] }
 0x244   : > { %v493_v51 = vmul.f32 %v492_v50, %v479_v47  ;;  %v494_v52 = vmul.f32 %v492_v50, %v480_v48  ;;  %v495_v53 = vmul.f32 %v492_v50, %v481_v49 }
 0x246   : > { %v496_v54 = vmax.f32 %v493_v51, 0.0  ;;  %v497_v55 = vmax.f32 %v494_v52, 0.0  ;;  %v498_v56 = vmax.f32 %v495_v53, 0.0 }
 0x248   : > { %v499_v57 = vmul.f32 %v496_v54, %v1029_v6  ;;  %v500_v58 = vmul.f32 %v497_v55, %v1027_v5  ;;  %v501_v60 = vmul.f32 %v498_v56, %v1033_v15 }
 0x24a   : > { %v502_v59 = vpack.c.bf16 %v500_v58, %v499_v57  ;;  %v503_v63 = vpack.c.bf16 %v501_v60, %v501_v60  ;;  %v880_v57 = vld [vmem:[%s1123_s3 + $0x4] sm:$0x3] }
 0x24c   : > { %v507_v61 = vunpack.c.h.b16 %v502_v59  ;;  %v508_v0 = vunpack.c.l.b16 %v503_v63  ;;  %v506_v2 = vunpack.c.l.b16 %v502_v59 }
 0x24e   : > { %v510_v62 = vpack.c.b16 %v507_v61, %v507_v61  ;;  %v511_v1 = vpack.c.b16 %v508_v0, %v508_v0  ;;  %v509_v3 = vpack.c.b16 %v506_v2, %v506_v2 }
 0x250   : > { %514 = vrot.lane.b32.xlu2 %v510_v62, %s916_s7 }
 0x258   : > { %516 = vrot.lane.b32.xlu2 %v511_v1, %s916_s7 }
 0x260   : > { %512 = vrot.lane.b32.xlu2 %v509_v3, %s916_s7 }
 0x2aa   : > { %v515_v4 = vpop.permute.xlu2 %514 }
 0x2b2   : > { %v517_v7 = vpop.permute.xlu2 %516 }
 0x2b3   : > { %v520_v16 = vsel %vm518_vm10, %v515_v4, %v517_v7 }
 0x2b4   : > { %v527_v17 = vsel %vm525_vm11, %v520_v16, 0 }
 0x2b5   : > { %v532_v18 = vrot.slane %v527_v17, 6  ;;  %v543_v19 = vrot.slane %v527_v17, 4 }
 0x2ba   : > { %v513_v8 = vpop.permute.xlu2 %512 }
 0x2bb   : > { %v519_v9 = vsel %vm518_vm10, %v513_v8, %v515_v4  ;;  %v524_v10 = vsel %vm518_vm10, 0, %v513_v8 }
 0x2bc   : > { %v541_v11 = vrot.slane %v524_v10, 4  ;;  %v530_v12 = vrot.slane %v524_v10, 6  ;;  %v542_v13 = vrot.slane %v519_v9, 4  ;;  %v531_v14 = vrot.slane %v519_v9, 6 }
 0x2be   : > { %544 = vrot.lane.b32.xlu0 %v541_v11, %s912_s21  ;;  %533 = vrot.lane.b32.xlu2 %v530_v12, %s913_s22 }
 0x2bf   : > { %546 = vrot.lane.b32.xlu1 %v542_v13, %s912_s21 }
 0x2c6   : > { %535 = vrot.lane.b32.xlu2 %v531_v14, %s913_s22 }
 0x2ce   : > { %537 = vrot.lane.b32.xlu2 %v532_v18, %s913_s22 }
 0x2d6   : > { %548 = vrot.lane.b32.xlu2 %v543_v19, %s912_s21 }
 0x318   : > { %v534_v20 = vpop.permute.xlu2 %533 }
 0x320   : > { %v536_v21 = vpop.permute.xlu2 %535 }
 0x321   : > { %v539_v23 = vsel %vm216_vm0, %v534_v20, %v536_v21 }
 0x322   : > { %v554_v30 = vsel %vm552_vm12, %v524_v10, %v539_v23 }
 0x328   : > { %v538_v22 = vpop.permute.xlu2 %537 }
 0x329   : > { %v540_v24 = vsel %vm216_vm0, %v536_v21, %v538_v22  ;;  %v559_v35 = vsel %vm552_vm12, %v527_v17, %v538_v22 }
 0x32a   : > { %v557_v31 = vsel %vm552_vm12, %v519_v9, %v540_v24 }
 0x330   : > { %v545_v25 = vpop.permute.xlu0 %544  ;;  %v549_v26 = vpop.permute.xlu2 %548 }
 0x331   : > { %v547_v27 = vpop.permute.xlu1 %546  ;;  %v565_v36 = vsel %vm228_vm2, %v559_v35, %v549_v26 }
 0x332   : > { %v550_v28 = vsel %vm225_vm1, %v545_v25, %v547_v27  ;;  %v551_v29 = vsel %vm225_vm1, %v547_v27, %v549_v26  ;;  %v640_v49 = vsel %vm584_vm13, %v565_v36, 0 }
 0x333   : > { %v561_v32 = vsel %vm228_vm2, %v554_v30, %v550_v28  ;;  %v563_v33 = vsel %vm228_vm2, %v557_v31, %v551_v29 }
 0x334   : > { %683 = vrot.lane.b32.xlu1 %v561_v32, %s915_s24  ;;  %572 = vrot.lane.b32.xlu2 %v561_v32, %s914_s23  ;;  %v636_v34 = vsel %vm584_vm13, %v561_v32, 0  ;;  %v638_v48 = vsel %vm584_vm13, %v563_v33, 0 }
 0x335   : > { %574 = vrot.lane.b32.xlu0 %v563_v33, %s914_s23  ;;  %649 = vmatpush.bf16.msrb.mxu0 %v636_v34 }
 0x338   : > { %877 = vmatmul.msk.bf16.vlgmr.msrb.gmra.mxu0 %vm580_vm14, %v566_v37 }
 0x33c   : > { %576 = vrot.lane.b32.xlu2 %v565_v36, %s914_s23 }
 0x33d   : > { %685 = vrot.lane.b32.xlu0 %v563_v33, %s915_s24 }
 0x344   : > { %687 = vrot.lane.b32.xlu2 %v565_v36, %s915_s24 }
 0x38e   : > { %v573_v38 = vpop.permute.xlu2 %572 }
 0x396   : > { %v577_v39 = vpop.permute.xlu2 %576 }
 0x397   : > { %v592_v40 = vsel %vm584_vm13, %v577_v39, 0 }
 0x398   : > { %627 = vmatpush.bf16.msra.mxu3 %v592_v40 }
 0x39b   : > { %876 = vmatmul.msk.bf16.vlgmr.msra.gmra.mxu3 %vm580_vm14, %v873_v41 }
 0x39e   : > { %v688_v47 = vpop.permute.xlu2 %687 }
 0x39f   : > { %v701_v50 = vsel %vm584_vm13, %v688_v47, 0 }
 0x3a6   : > { %v684_v51 = vpop.permute.xlu1 %683 }
 0x3a7   : > { %v575_v42 = vpop.permute.xlu0 %574 }
 0x3a8   : > { %v578_v43 = vsel %vm259_vm4, %v573_v38, %v575_v42  ;;  %v579_v44 = vsel %vm259_vm4, %v575_v42, %v577_v39 }
 0x3a9   : > { %v586_v45 = vsel %vm584_vm13, %v578_v43, 0  ;;  %v589_v46 = vsel %vm584_vm13, %v579_v44, 0 }
 0x3aa   : > { %601 = vmatpush.bf16.msra.mxu1 %v586_v45  ;;  %614 = vmatpush.bf16.msra.mxu2 %v589_v46 }
 0x3ad   : > { %874 = vmatmul.msk.bf16.vlgmr.msra.gmra.mxu1 %vm580_vm14, %v873_v41  ;;  %875 = vmatmul.msk.bf16.vlgmr.msra.gmra.mxu2 %vm580_vm14, %v873_v41 }
 0x3ae   : > { %662 = vmatpush.bf16.msrb.mxu1 %v638_v48  ;;  %675 = vmatpush.bf16.msrb.mxu2 %v640_v49 }
 0x3af   : > { %v686_v52 = vpop.permute.xlu0 %685 }
 0x3b0   : > { %v689_v53 = vsel %vm384_vm5, %v684_v51, %v686_v52  ;;  %v690_v54 = vsel %vm384_vm5, %v686_v52, %v688_v47 }
 0x3b1   : > { %v695_v55 = vsel %vm584_vm13, %v689_v53, 0  ;;  %v698_v56 = vsel %vm584_vm13, %v690_v54, 0 }
 0x3b2   : > { %736 = vmatpush.bf16.msra.mxu1 %v701_v50  ;;  %710 = vmatpush.bf16.msrb.mxu3 %v695_v55 }
 0x3b3   : > { %723 = vmatpush.bf16.msra.mxu0 %v698_v56 }
 0x3b5   : > { %881 = vmatmul.msk.bf16.vlgmr.msrb.gmra.mxu3 %vm580_vm14, %v880_v57  ;;  %v651_v58 = vpop.f32.mrf.mxu0 }
 0x3b6   : > { %882 = vmatmul.msk.bf16.vlgmr.msra.gmra.mxu0 %vm580_vm14, %v880_v57 }
 0x3bd   : > { %878 = vmatmul.msk.bf16.vlgmr.msrb.gmra.mxu1 %vm580_vm14, %v566_v37  ;;  %879 = vmatmul.msk.bf16.vlgmr.msrb.gmra.mxu2 %vm580_vm14, %v566_v37  ;;  %v653_v59 = vpop.f32.mrf.mxu0 }
 0x3cd   : > { %883 = vmatmul.msk.bf16.vlgmr.msra.gmra.mxu1 %vm580_vm14, %v880_v57 }
 0x41e   : > { %v629_v60 = vpop.f32.mrf.mxu3 }
 0x426   : > { %v631_v61 = vpop.f32.mrf.mxu3 }
 0x42a   : > { %v603_v62 = vpop.f32.mrf.mxu1 }
 0x42b   : > { %v652_v11 = vadd.f32 %v651_v58, %v603_v62 }
 0x430   : > { %v616_v63 = vpop.f32.mrf.mxu2 }
 0x432   : > { %v605_v0 = vpop.f32.mrf.mxu1 }
 0x433   : > { %v725_v1 = vpop.f32.mrf.mxu0 }
 0x438   : > { %v712_v2 = vpop.f32.mrf.mxu3  ;;  %v618_v3 = vpop.f32.mrf.mxu2 }
 0x439   : > { %v742_v14 = vadd.f32 %v712_v2, %v652_v11 }
 0x43a   : > { %v664_v4 = vpop.f32.mrf.mxu1 }
 0x43b   : > { %v727_v7 = vpop.f32.mrf.mxu0  ;;  %v665_v8 = vadd.f32 %v664_v4, %v616_v63  ;;  %v745_v17 = vmul.f32 %v742_v14, %v1029_v6 }
 0x43d   : > { %v743_v12 = vadd.f32 %v725_v1, %v665_v8  ;;  %v756_v22 = vmul.f32 %v745_v17, %v742_v14  ;;  %v748_v26 = vsel %vm228_vm2, %v745_v17, 0.0 }
 0x43f   : > { %v746_v16 = vmul.f32 %v743_v12, %v1027_v5  ;;  %v759_v31 = vsel %vm228_vm2, %v756_v22, 0.0 }
 0x440   : > { %v677_v9 = vpop.f32.mrf.mxu2  ;;  %v714_v10 = vpop.f32.mrf.mxu3 }
 0x441   : > { %v757_v19 = vmul.f32 %v746_v16, %v743_v12  ;;  %v678_v20 = vadd.f32 %v677_v9, %v629_v60  ;;  %v749_v24 = vsel %vm228_vm2, %v746_v16, 0.0 }
 0x442   : > { %v666_v13 = vpop.f32.mrf.mxu1  ;;  %v750_v28 = vadd.f32 %v749_v24, %v748_v26 }
 0x443   : > { %v760_v27 = vsel %vm228_vm2, %v757_v19, 0.0 }
 0x444   : > { %v761_v33 = vadd.f32 %v760_v27, %v759_v31 }
 0x448   : > { %v679_v18 = vpop.f32.mrf.mxu2 }
 0x44a   : > { %v738_v21 = vpop.f32.mrf.mxu1 }
 0x44b   : > { %v744_v23 = vadd.f32 %v738_v21, %v678_v20 }
 0x44d   : > { %v747_v25 = vmul.f32 %v744_v23, %v1033_v15 }
 0x44f   : > { %v751_v29 = vsel %vm459_vm6, %v747_v25, 0.0  ;;  %v758_v30 = vmul.f32 %v747_v25, %v744_v23 }
 0x450   : > { %v752_v32 = vadd.f32 %v751_v29, %v750_v28 }
 0x451   : > { %v762_v34 = vsel %vm459_vm6, %v758_v30, 0.0 }
 0x452   : > { %753 = vadd.xlane.f32.xlu1 %v752_v32  ;;  %v763_v35 = vadd.f32 %v762_v34, %v761_v33  ;;  %v740_v36 = vpop.f32.mrf.mxu1 }
 0x454   : > { %764 = vadd.xlane.f32.xlu0 %v763_v35 }
 0x4c5   : > { %v754_v37 = vpop.xlane.xlu1 %753 }
 0x4c6   : > { %v755_v38 = vmul.f32 0.00390625, %v754_v37 }
 0x4c7   : > { %v765_v39 = vpop.xlane.xlu0 %764 }
 0x4c8   : > { %v766_v40 = vmul.f32 0.00390625, %v765_v39  ;;  %v767_v41 = vmul.f32 %v755_v38, %v755_v38  ;;  %v770_v51 = vsub.f32 %v742_v14, %v755_v38  ;;  %v771_v52 = vsub.f32 %v743_v12, %v755_v38 }
 0x4c9   : > { %v772_v53 = vsub.f32 %v744_v23, %v755_v38 }
 0x4ca   : > { %v768_v42 = vsub.f32 %v766_v40, %v767_v41 }
 0x4cc   : > { %v769_v43 = vmax.f32 %v768_v42, 0.0 }
 0x4ce   : > { %v773_v44 = vadd.f32 1e-05, %v769_v43 }
 0x4d0   : > { %902 = vrsqrt.f32 %v773_v44  ;;  %vm780_vm0 = vweird.f32 %v773_v44 }
 0x4d6   : > { %v903_v45 = vpop.eup %902 }
 0x4d7   : > { %v775_v46 = vmul.f32 %v903_v45, %v773_v44  ;;  %vm781_vm15 = vweird.f32 %v903_v45 }
 0x4d8   : > { %vm782_vm1 = vmor %vm780_vm0, %vm781_vm15 }
 0x4d9   : > { %v776_v47 = vmul.f32 %v903_v45, %v775_v46 }
 0x4db   : > { %v777_v48 = vmul.f32 0.5, %v776_v47 }
 0x4dd   : > { %v778_v49 = vsub.f32 1.5, %v777_v48 }
 0x4df   : > { %v779_v50 = vmul.f32 %v903_v45, %v778_v49 }
 0x4e1   : > { %v783_v54 = vsel %vm782_vm1, %v903_v45, %v779_v50 }
 0x4e2   : > { %v784_v55 = vmul.f32 %v783_v54, %v770_v51  ;;  %v785_v56 = vmul.f32 %v783_v54, %v771_v52  ;;  %v786_v57 = vmul.f32 %v783_v54, %v772_v53 }
 0x4e4   : > { %v787_v58 = vmax.f32 %v784_v55, 0.0  ;;  %v788_v59 = vmax.f32 %v785_v56, 0.0  ;;  %v789_v60 = vmax.f32 %v786_v57, 0.0 }
 0x4e6   : > { %v791_v61 = vmul.f32 %v788_v59, %v1027_v5  ;;  %v792_v62 = vmul.f32 %v789_v60, %v1033_v15  ;;  %v790_v63 = vmul.f32 %v787_v58, %v1029_v6 }
 0x4e8   : > { %v795_v0 = vrot.slane %v791_v61, 4  ;;  %799 = vst.msk [vmem:[%s197_s19 + $0x8] sm:$0xf] %vm459_vm6, %v792_v62 }
 0x4ea   : > { %v796_v1 = vsel %vm228_vm2, %v790_v63, %v795_v0 }
 0x4eb   : > { %798 = vst [vmem:[%s197_s19] sm:$0xff] %v796_v1 }
 0x4ec PF: > { %s14_s15 = sadd.s32 1, %s910_s15  }
 0x4ed   : > { %p11_p4 = scmp.ge.s32.totalorder %s14_s15, 4  }
 0x4ef   :  { %13 = sbr.rel (!%p11_p4) target bundleno = 1 (0x1), region = 70 }

</bundles_post_ra>
